<compile_context>
chip_gen: v7x
topology: tpu7x:2x2x1
jax: 0.10.0
libtpu: 0.0.40
codegen_flags: <defaults>
</compile_context>

<pallas_src>
import functools

import jax
import jax.numpy as jnp
from jax.experimental import pallas as pl
from jax.experimental.pallas import tpu as pltpu


# --------------------------------------------------------------------------- #
# Kernel
# --------------------------------------------------------------------------- #
def invertible_block_kernel(
    x_ref,                                   # (TB, 2*dim) activation tile
    st2_w1, st2_b1, st2_w2, st2_b2,          # fused s2/t2 weights (resident)
    st1_w1, st1_b1, st1_w2, st1_b2,          # fused s1/t1 weights (resident)
    out_ref,                                 # (TB, 2*dim) output tile
):
    x = x_ref[...]
    dim = x.shape[1] // 2
    u1 = x[:, :dim]
    u2 = x[:, dim:]

    def fused_st(inp, w1, b1, w2, b2):
        # Returns [s(inp) | t(inp)] as a lane-dense (TB, 2*dim) block.
        # Matmul operands may be bf16 (w refs carry the dtype); accumulate in f32,
        # biases and ReLU/epilogue stay in f32.
        h = jnp.dot(inp.astype(w1.dtype), w1[...],
                    preferred_element_type=jnp.float32) + b1[...]
        h = jnp.maximum(h, 0.0)
        return jnp.dot(h.astype(w2.dtype), w2[...],
                       preferred_element_type=jnp.float32) + b2[...]

    # v1 = u1 * exp(s2(u2)) + t2(u2)
    st2 = fused_st(u2, st2_w1, st2_b1, st2_w2, st2_b2)
    v1 = u1 * jnp.exp(st2[:, :dim]) + st2[:, dim:]

    # v2 = u2 * exp(s1(v1)) + t1(v1)
    st1 = fused_st(v1, st1_w1, st1_b1, st1_w2, st1_b2)
    v2 = u2 * jnp.exp(st1[:, :dim]) + st1[:, dim:]

    # Single full-width, lane-dense store.
    out_ref[...] = jnp.concatenate([v1, v2], axis=1).astype(out_ref.dtype)


# --------------------------------------------------------------------------- #
# Parameter construction / packing
# --------------------------------------------------------------------------- #
def init_feedforward_params(key, in_size, hidden_size, out_size, scale=0.1):
    """Deterministic synthetic params. Weights stored transposed for x @ W + b:
       w1: (in, hidden), b1: (1, hidden), w2: (hidden, out), b2: (1, out)."""
    k1, k2, k3, k4 = jax.random.split(key, 4)
    w1 = scale * jax.random.normal(k1, (in_size, hidden_size), jnp.float32)
    b1 = scale * jax.random.normal(k2, (1, hidden_size), jnp.float32)
    w2 = scale * jax.random.normal(k3, (hidden_size, out_size), jnp.float32)
    b2 = scale * jax.random.normal(k4, (1, out_size), jnp.float32)
    return (w1, b1, w2, b2)


def make_invertible_block_params(key, input_output_size, hidden_size):
    assert input_output_size % 2 == 0
    dim = input_output_size // 2
    keys = jax.random.split(key, 4)
    # order: s1, s2, t1, t2 (each a 4-tuple)
    return tuple(init_feedforward_params(k, dim, hidden_size, dim) for k in keys)


def _pack_st_pair(s_params, t_params, matmul_dtype):
    """Fuse an (s, t) pair sharing the same input:
       w1: (dim, 2*hidden) = [s_w1 | t_w1],   b1: (1, 2*hidden)
       w2: (2*hidden, 2*dim) block-diagonal,  b2: (1, 2*dim)
    so that relu(x @ w1 + b1) @ w2 + b2 == [s(x) | t(x)] (lane-dense)."""
    s_w1, s_b1, s_w2, s_b2 = s_params
    t_w1, t_b1, t_w2, t_b2 = t_params
    hidden = s_w1.shape[1]
    dim = s_w2.shape[1]

    w1 = jnp.concatenate([s_w1, t_w1], axis=1).astype(matmul_dtype)
    b1 = jnp.concatenate([s_b1, t_b1], axis=1)                       # f32 bias
    w2 = jnp.zeros((2 * hidden, 2 * dim), jnp.float32)
    w2 = w2.at[:hidden, :dim].set(s_w2).at[hidden:, dim:].set(t_w2)
    w2 = w2.astype(matmul_dtype)
    b2 = jnp.concatenate([s_b2, t_b2], axis=1)                       # f32 bias
    return w1, b1, w2, b2


def _pick_row_block(batch):
    """Largest power-of-two row block (<= 1024) dividing the batch, else full batch."""
    for cand in (1024, 512, 256, 128, 64, 32, 16, 8):
        if batch % cand == 0:
            return cand
    return batch


# --------------------------------------------------------------------------- #
# Wrapper
# --------------------------------------------------------------------------- #
@functools.partial(jax.jit, static_argnames=("tb", "matmul_dtype"))
def invertible_block_forward(x, params, tb=None, matmul_dtype=jnp.float32):
    """x: (B, input_output_size) float32; params: (s1, s2, t1, t2) FeedForward tuples."""
    B, io = x.shape
    assert io % 2 == 0
    s1, s2, t1, t2 = params

    # Pack once in the wrapper (not per grid step).
    packed = _pack_st_pair(s2, t2, matmul_dtype) + _pack_st_pair(s1, t1, matmul_dtype)

    if tb is None:
        tb = _pick_row_block(B)
    assert B % tb == 0, f"batch {B} must be divisible by row block {tb}"
    grid = (B // tb,)

    x_spec = pl.BlockSpec((tb, io), lambda i: (i, 0))
    out_spec = pl.BlockSpec((tb, io), lambda i: (i, 0))
    # Weights: full arrays, constant block index -> stay resident across grid steps.
    weight_specs = [pl.BlockSpec(w.shape, lambda i: (0, 0)) for w in packed]

    return pl.pallas_call(
        invertible_block_kernel,
        out_shape=jax.ShapeDtypeStruct((B, io), jnp.float32),
        grid=grid,
        in_specs=[x_spec] + weight_specs,
        out_specs=out_spec,
        compiler_params=pltpu.CompilerParams(
            dimension_semantics=("parallel",),        # megacore-shardable batch axis
            vmem_limit_bytes=32 * 1024 * 1024,        # explicit, safe on v7x's 64 MiB
        ),
    )(x, *packed)


# --------------------------------------------------------------------------- #
# Pure-JAX reference (matches the PyTorch module)
# --------------------------------------------------------------------------- #
def reference_forward(x, params):
    dim = x.shape[1] // 2
    u1, u2 = x[:, :dim], x[:, dim:]

    def ff(xx, p):
        w1, b1, w2, b2 = p
        return jnp.maximum(xx @ w1 + b1, 0.0) @ w2 + b2

    s1, s2, t1, t2 = params
    v1 = u1 * jnp.exp(ff(u2, s2)) + ff(u2, t2)
    v2 = u2 * jnp.exp(ff(v1, s1)) + ff(v1, t1)
    return jnp.concatenate([v1, v2], axis=1)


# TODO(synk): module's backward() (inverse pass) and z_dist prior are not part of
# forward() and are not implemented here.

if __name__ == "__main__":
    # Small, deterministic example consistent with the module's shapes.
    batch = 32
    input_output_size = 128   # dim = 64 per half
    hidden_size = 128

    key = jax.random.PRNGKey(0)
    kx, kp = jax.random.split(key)
    x = jax.random.normal(kx, (batch, input_output_size), jnp.float32)
    params = make_invertible_block_params(kp, input_output_size, hidden_size)

    # f32 path, 4-step batch grid (exercises the pipeline).
    out = invertible_block_forward(x, params, tb=8)
    out = jax.block_until_ready(out)

    ref = reference_forward(x, params)
    assert out.shape == (batch, input_output_size)
    assert jnp.allclose(out, ref, atol=1e-4, rtol=1e-4), "Pallas kernel mismatch vs reference"

    # bf16-matmul path (MXU-native on v6e/v7x); f32 accumulate + f32 epilogue.
    out_bf16 = jax.block_until_ready(
        invertible_block_forward(x, params, tb=8, matmul_dtype=jnp.bfloat16))
    rel_err = jnp.max(jnp.abs(out_bf16 - ref) / (jnp.abs(ref) + 1.0))
    assert rel_err < 0.25, f"bf16 path diverged: max scaled error {rel_err}"

    print("KERNEL_OK")
</pallas_src>

<mosaic_0001>
module attributes {stable_mosaic.version = 11 : i64} {
  func.func @invertible_block_kernel(%arg0: i32, %arg1: memref<8x128xf32, #tpu.memory_space<vmem>>, %arg2: memref<64x256xf32, #tpu.memory_space<vmem>>, %arg3: memref<1x256xf32, #tpu.memory_space<vmem>>, %arg4: memref<256x128xf32, #tpu.memory_space<vmem>>, %arg5: memref<1x128xf32, #tpu.memory_space<vmem>>, %arg6: memref<64x256xf32, #tpu.memory_space<vmem>>, %arg7: memref<1x256xf32, #tpu.memory_space<vmem>>, %arg8: memref<256x128xf32, #tpu.memory_space<vmem>>, %arg9: memref<1x128xf32, #tpu.memory_space<vmem>>, %arg10: memref<8x128xf32, #tpu.memory_space<vmem>>) attributes {dimension_semantics = [#tpu.dimension_semantics<parallel>], iteration_bounds = array<i64: 4>, scalar_prefetch = 0 : i64, scratch_operands = 0 : i64, tpu.core_type = #tpu.core_type<tc>, window_params = [{transform_indices = @transform_0, window_bounds = array<i64: 8, 128>}, {pipeline_mode = #tpu.pipeline_mode<synchronous>, transform_indices = @transform_1, window_bounds = array<i64: 64, 256>}, {pipeline_mode = #tpu.pipeline_mode<synchronous>, transform_indices = @transform_2, window_bounds = array<i64: 1, 256>}, {pipeline_mode = #tpu.pipeline_mode<synchronous>, transform_indices = @transform_3, window_bounds = array<i64: 256, 128>}, {pipeline_mode = #tpu.pipeline_mode<synchronous>, transform_indices = @transform_4, window_bounds = array<i64: 1, 128>}, {pipeline_mode = #tpu.pipeline_mode<synchronous>, transform_indices = @transform_5, window_bounds = array<i64: 64, 256>}, {pipeline_mode = #tpu.pipeline_mode<synchronous>, transform_indices = @transform_6, window_bounds = array<i64: 1, 256>}, {pipeline_mode = #tpu.pipeline_mode<synchronous>, transform_indices = @transform_7, window_bounds = array<i64: 256, 128>}, {pipeline_mode = #tpu.pipeline_mode<synchronous>, transform_indices = @transform_8, window_bounds = array<i64: 1, 128>}, {transform_indices = @transform_9, window_bounds = array<i64: 8, 128>}]} {
    %c0 = arith.constant 0 : index
    %c0_0 = arith.constant 0 : index
    %0 = vector.load %arg1[%c0, %c0_0] : memref<8x128xf32, #tpu.memory_space<vmem>>, vector<8x128xf32>
    %1 = vector.extract_strided_slice %0 {offsets = [0, 0], sizes = [8, 64], strides = [1, 1]} : vector<8x128xf32> to vector<8x64xf32>
    %2 = vector.extract_strided_slice %0 {offsets = [0, 64], sizes = [8, 64], strides = [1, 1]} : vector<8x128xf32> to vector<8x64xf32>
    %c0_1 = arith.constant 0 : index
    %c0_2 = arith.constant 0 : index
    %3 = vector.load %arg2[%c0_1, %c0_2] : memref<64x256xf32, #tpu.memory_space<vmem>>, vector<64x256xf32>
    %cst = arith.constant dense<0.000000e+00> : vector<8x256xf32>
    %4 = tpu.matmul %2, %3, %cst {dimension_numbers = #tpu.dot_dimension_numbers<[1], [0], [0], [1], [0, 0, 1, 1], [], []>} : vector<8x64xf32>, vector<64x256xf32>, vector<8x256xf32> -> vector<8x256xf32>
    %c0_3 = arith.constant 0 : index
    %c0_4 = arith.constant 0 : index
    %5 = vector.load %arg3[%c0_3, %c0_4] : memref<1x256xf32, #tpu.memory_space<vmem>>, vector<1x256xf32>
    %6 = vector.broadcast %5 : vector<1x256xf32> to vector<8x256xf32>
    %7 = arith.addf %4, %6 : vector<8x256xf32>
    %cst_5 = arith.constant 0.000000e+00 : f32
    %8 = vector.broadcast %cst_5 : f32 to vector<8x256xf32>
    %9 = arith.maximumf %7, %8 : vector<8x256xf32>
    %c0_6 = arith.constant 0 : index
    %c0_7 = arith.constant 0 : index
    %10 = vector.load %arg4[%c0_6, %c0_7] : memref<256x128xf32, #tpu.memory_space<vmem>>, vector<256x128xf32>
    %cst_8 = arith.constant dense<0.000000e+00> : vector<8x128xf32>
    %11 = tpu.matmul %9, %10, %cst_8 {dimension_numbers = #tpu.dot_dimension_numbers<[1], [0], [0], [1], [0, 0, 1, 1], [], []>} : vector<8x256xf32>, vector<256x128xf32>, vector<8x128xf32> -> vector<8x128xf32>
    %c0_9 = arith.constant 0 : index
    %c0_10 = arith.constant 0 : index
    %12 = vector.load %arg5[%c0_9, %c0_10] : memref<1x128xf32, #tpu.memory_space<vmem>>, vector<1x128xf32>
    %13 = vector.broadcast %12 : vector<1x128xf32> to vector<8x128xf32>
    %14 = arith.addf %11, %13 : vector<8x128xf32>
    %15 = vector.extract_strided_slice %14 {offsets = [0, 0], sizes = [8, 64], strides = [1, 1]} : vector<8x128xf32> to vector<8x64xf32>
    %16 = math.exp %15 : vector<8x64xf32>
    %17 = arith.mulf %1, %16 : vector<8x64xf32>
    %18 = vector.extract_strided_slice %14 {offsets = [0, 64], sizes = [8, 64], strides = [1, 1]} : vector<8x128xf32> to vector<8x64xf32>
    %19 = arith.addf %17, %18 : vector<8x64xf32>
    %c0_11 = arith.constant 0 : index
    %c0_12 = arith.constant 0 : index
    %20 = vector.load %arg6[%c0_11, %c0_12] : memref<64x256xf32, #tpu.memory_space<vmem>>, vector<64x256xf32>
    %cst_13 = arith.constant dense<0.000000e+00> : vector<8x256xf32>
    %21 = tpu.matmul %19, %20, %cst_13 {dimension_numbers = #tpu.dot_dimension_numbers<[1], [0], [0], [1], [0, 0, 1, 1], [], []>} : vector<8x64xf32>, vector<64x256xf32>, vector<8x256xf32> -> vector<8x256xf32>
    %c0_14 = arith.constant 0 : index
    %c0_15 = arith.constant 0 : index
    %22 = vector.load %arg7[%c0_14, %c0_15] : memref<1x256xf32, #tpu.memory_space<vmem>>, vector<1x256xf32>
    %23 = vector.broadcast %22 : vector<1x256xf32> to vector<8x256xf32>
    %24 = arith.addf %21, %23 : vector<8x256xf32>
    %cst_16 = arith.constant 0.000000e+00 : f32
    %25 = vector.broadcast %cst_16 : f32 to vector<8x256xf32>
    %26 = arith.maximumf %24, %25 : vector<8x256xf32>
    %c0_17 = arith.constant 0 : index
    %c0_18 = arith.constant 0 : index
    %27 = vector.load %arg8[%c0_17, %c0_18] : memref<256x128xf32, #tpu.memory_space<vmem>>, vector<256x128xf32>
    %cst_19 = arith.constant dense<0.000000e+00> : vector<8x128xf32>
    %28 = tpu.matmul %26, %27, %cst_19 {dimension_numbers = #tpu.dot_dimension_numbers<[1], [0], [0], [1], [0, 0, 1, 1], [], []>} : vector<8x256xf32>, vector<256x128xf32>, vector<8x128xf32> -> vector<8x128xf32>
    %c0_20 = arith.constant 0 : index
    %c0_21 = arith.constant 0 : index
    %29 = vector.load %arg9[%c0_20, %c0_21] : memref<1x128xf32, #tpu.memory_space<vmem>>, vector<1x128xf32>
    %30 = vector.broadcast %29 : vector<1x128xf32> to vector<8x128xf32>
    %31 = arith.addf %28, %30 : vector<8x128xf32>
    %32 = vector.extract_strided_slice %31 {offsets = [0, 0], sizes = [8, 64], strides = [1, 1]} : vector<8x128xf32> to vector<8x64xf32>
    %33 = math.exp %32 : vector<8x64xf32>
    %34 = arith.mulf %2, %33 : vector<8x64xf32>
    %35 = vector.extract_strided_slice %31 {offsets = [0, 64], sizes = [8, 64], strides = [1, 1]} : vector<8x128xf32> to vector<8x64xf32>
    %36 = arith.addf %34, %35 : vector<8x64xf32>
    %37 = tpu.concatenate %19, %36 in 1 : vector<8x64xf32>, vector<8x64xf32> -> vector<8x128xf32>
    %c0_22 = arith.constant 0 : index
    %c0_23 = arith.constant 0 : index
    %38 = vector.load %arg10[%c0_22, %c0_23] : memref<8x128xf32, #tpu.memory_space<vmem>>, vector<8x128xf32>
    tpu.vector_store %arg10[%c0_22, %c0_23], %37 {strides = array<i32>} : memref<8x128xf32, #tpu.memory_space<vmem>>, vector<8x128xf32>,
    return
  }
  func.func @transform_0(%arg0: i32) -> (i32, i32) {
    %c0_i32 = arith.constant 0 : i32
    %c0_i32_0 = arith.constant 0 : i32
    return %arg0, %c0_i32 : i32, i32
  }
  func.func @transform_1(%arg0: i32) -> (i32, i32) {
    %c0_i32 = arith.constant 0 : i32
    %c0_i32_0 = arith.constant 0 : i32
    %c0_i32_1 = arith.constant 0 : i32
    return %c0_i32, %c0_i32_0 : i32, i32
  }
  func.func @transform_2(%arg0: i32) -> (i32, i32) {
    %c0_i32 = arith.constant 0 : i32
    %c0_i32_0 = arith.constant 0 : i32
    %c0_i32_1 = arith.constant 0 : i32
    return %c0_i32, %c0_i32_0 : i32, i32
  }
  func.func @transform_3(%arg0: i32) -> (i32, i32) {
    %c0_i32 = arith.constant 0 : i32
    %c0_i32_0 = arith.constant 0 : i32
    %c0_i32_1 = arith.constant 0 : i32
    return %c0_i32, %c0_i32_0 : i32, i32
  }
  func.func @transform_4(%arg0: i32) -> (i32, i32) {
    %c0_i32 = arith.constant 0 : i32
    %c0_i32_0 = arith.constant 0 : i32
    %c0_i32_1 = arith.constant 0 : i32
    return %c0_i32, %c0_i32_0 : i32, i32
  }
  func.func @transform_5(%arg0: i32) -> (i32, i32) {
    %c0_i32 = arith.constant 0 : i32
    %c0_i32_0 = arith.constant 0 : i32
    %c0_i32_1 = arith.constant 0 : i32
    return %c0_i32, %c0_i32_0 : i32, i32
  }
  func.func @transform_6(%arg0: i32) -> (i32, i32) {
    %c0_i32 = arith.constant 0 : i32
    %c0_i32_0 = arith.constant 0 : i32
    %c0_i32_1 = arith.constant 0 : i32
    return %c0_i32, %c0_i32_0 : i32, i32
  }
  func.func @transform_7(%arg0: i32) -> (i32, i32) {
    %c0_i32 = arith.constant 0 : i32
    %c0_i32_0 = arith.constant 0 : i32
    %c0_i32_1 = arith.constant 0 : i32
    return %c0_i32, %c0_i32_0 : i32, i32
  }
  func.func @transform_8(%arg0: i32) -> (i32, i32) {
    %c0_i32 = arith.constant 0 : i32
    %c0_i32_0 = arith.constant 0 : i32
    %c0_i32_1 = arith.constant 0 : i32
    return %c0_i32, %c0_i32_0 : i32, i32
  }
  func.func @transform_9(%arg0: i32) -> (i32, i32) {
    %c0_i32 = arith.constant 0 : i32
    %c0_i32_0 = arith.constant 0 : i32
    return %arg0, %c0_i32 : i32, i32
  }
}

</mosaic_0001>

<bundles_post_ra>
// kernel: invertible_block_forward.1
= control target key start
LH: loop header
LB: loop body
LE: loop exit
PB: predicated region body
PF: predicated region fallthrough
CT: control target
= control target key end

     0   :  { %14 = vsyncpa [#allocation3], 0  ;;  %s1618_s0 = inlined_call_operand.vmem [shape: f32[32,128], index: 0, kind: input, shape index: {}]   ;;  %s1619_s1 = inlined_call_operand.vmem [shape: f32[64,256], index: 1, kind: input, shape index: {}]   ;;  %s1620_s2 = inlined_call_operand.vmem [shape: f32[1,256], index: 2, kind: input, shape index: {}]   ;;  %s1621_s3 = inlined_call_operand.vmem [shape: f32[256,128], index: 3, kind: input, shape index: {}]   ;;  %s1622_s4 = inlined_call_operand.vmem [shape: f32[1,128], index: 4, kind: input, shape index: {}]   ;;  %s1623_s5 = inlined_call_operand.vmem [shape: f32[64,256], index: 5, kind: input, shape index: {}]   ;;  %s1624_s6 = inlined_call_operand.vmem [shape: f32[1,256], index: 6, kind: input, shape index: {}]   ;;  %s1625_s7 = inlined_call_operand.vmem [shape: f32[256,128], index: 7, kind: input, shape index: {}]   ;;  %s1626_s8 = inlined_call_operand.vmem [shape: f32[1,128], index: 8, kind: input, shape index: {}]   ;;  %s1627_s9 = inlined_call_operand.hbm [shape: f32[32,128], index: 9, kind: output, shape index: {}]  }
   0x1   :  { %16 = vsyncpa [#allocation3 + $0x1], 0  ;;  %s1191_s30 = smov 0   ;;  %s1193_s10 = smov 0  }
   0x2   :  { %s1195_s11 = smov 0   ;;  %s1197_s12 = smov 0  }
   0x3 LB: > { %s1212_s13 = sadd.s32 4294967295, %s1136_s12   ;;  %s849_s14 = sadd.s32 4294967294, %s1136_s12   ;;  %s1136_s12 = sphi %s1197_s12, %s1633_s12   ;;  %s1132_s11 = sphi %s1195_s11, %s1632_s11   ;;  %s1128_s10 = sphi %s1193_s10, %s1631_s10   ;;  %s1124_s30 = sphi %s1191_s30, %s1630_s30  }
   0x4   : > { %s1216_s15 = sadd.s32 1, %s1136_s12   ;;  %s223_s16 = sadd.s32 1, %s1132_s11 }
   0x5   : > { %s220_s17 = ssub.s32 %s1136_s12, %s1216_s15  ;;  %p233_p0 = scmp.ne.s32.totalorder %s1132_s11, %s1128_s10 }
   0x6   : > { %p221_p1 = scmp.eq.s32.totalorder %s220_s17, 0  ;;  %p234_p2 = scmp.eq.s32.totalorder %s1212_s13, 3 }
   0x7   : > { %p239_p3 = scmp.ne.s32.totalorder %s1128_s10, %s1124_s30  ;;  %p240_p4 = scmp.eq.s32.totalorder %s849_s14, 3 }
   0x8   : > { %s1227_s18 = scalar_select %p221_p1, %s1132_s11, %s223_s16  }
   0x9   : > { %p1229_p5 = por %p234_p2, %p233_p0  ;;  %p1233_p6 = por %p240_p4, %p239_p3 }
   0xa   : > { %p852_p7 = scmp.ge.s32.totalorder %s1136_s12, 1  ;;  %p289_p8 = scmp.lt.s32.totalorder %s1136_s12, 5 }
   0xc   : > { %p290_p9 = pnand %p852_p7, %p289_p8 }
   0xd   : > { %p324_p10 = scmp.lt.s32.totalorder (!%p290_p9), %s1212_s13, 3  ;;  %v330_v0 = vld [vmem:[%s1619_s1 + $0x8] sm:$0xff] (!%p290_p9)  ;;  %v332_v1 = vld [vmem:[%s1619_s1 + $0x18] sm:$0xff] (!%p290_p9)  ;;  %v329_v2 = vld [vmem:[%s1619_s1] sm:$0xff] (!%p290_p9)  ;;  %v1138_v7 = vmov (!%p290_p9), 0.0   ;;  %vm360_vm0 = vcmask (!%p290_p9), 523264  }
   0xe   : > { %293 = sbr.rel (%p290_p9) target bundleno = 1275 (0x4fb), region = 56  ;;  %v933_v3 = vpack.c.bf16 (!%p290_p9), %v332_v1, %v330_v0  ;;  %v331_v4 = vld [vmem:[%s1619_s1 + $0x10] sm:$0xff] (!%p290_p9)  ;;  %v334_v5 = vld [vmem:[%s1619_s1 + $0x28] sm:$0xff] (!%p290_p9)  ;;  %v336_v6 = vld [vmem:[%s1619_s1 + $0x38] sm:$0xff] (!%p290_p9)  ;;  %427 = vmatprep.mubr.f32.mxu1 (!%p290_p9), %v1138_v7  ;;  %648 = vmatprep.mubr.f32.mxu0 (!%p290_p9), %v1138_v7  ;;  %s321_s27 = sand.u32 (!%p290_p9), 1, %s1128_s10  }
   0xf   : > { %v935_v8 = vpack.c.bf16 (!%p290_p9), %v331_v4, %v329_v2  ;;  %v937_v9 = vpack.c.bf16 (!%p290_p9), %v336_v6, %v334_v5  ;;  %v333_v10 = vld [vmem:[%s1619_s1 + $0x20] sm:$0xff] (!%p290_p9)  ;;  %v335_v11 = vld [vmem:[%s1619_s1 + $0x30] sm:$0xff] (!%p290_p9)  ;;  %v338_v12 = vld [vmem:[%s1619_s1 + $0x48] sm:$0xff] (!%p290_p9)  ;;  %s860_s28 = sshll.u32 (!%p290_p9), %s1212_s13, 7 }
  0x10   : > { %934 = vmatprep.subr.bf16.mxu1 (!%p290_p9), %v933_v3  ;;  %v340_v13 = vld [vmem:[%s1619_s1 + $0x58] sm:$0xff] (!%p290_p9)  ;;  %v939_v14 = vpack.c.bf16 (!%p290_p9), %v335_v11, %v333_v10  ;;  %v337_v16 = vld [vmem:[%s1619_s1 + $0x40] sm:$0xff] (!%p290_p9)  ;;  %v339_v17 = vld [vmem:[%s1619_s1 + $0x50] sm:$0xff] (!%p290_p9)  ;;  %v347_v11 = vlaneseq (!%p290_p9)  ;;  %s1574_s23 = scalar_lea.hbm (!%p290_p9), %s1627_s9, %s860_s28 }
  0x11   : > { %936 = vmatpush1.bf16.msra.mxu1 (!%p290_p9), %v935_v8  ;;  %v941_v15 = vpack.c.bf16 (!%p290_p9), %v340_v13, %v338_v12  ;;  %v342_v19 = vld [vmem:[%s1619_s1 + $0x68] sm:$0xff] (!%p290_p9)  ;;  %v344_v20 = vld [vmem:[%s1619_s1 + $0x78] sm:$0xff] (!%p290_p9)  ;;  %v943_v21 = vpack.c.bf16 (!%p290_p9), %v339_v17, %v337_v16  ;;  %v341_v23 = vld [vmem:[%s1619_s1 + $0x60] sm:$0xff] (!%p290_p9) }
  0x12   : > { %938 = vmatprep.subr.bf16.mxu1 (!%p290_p9), %v937_v9  ;;  %v945_v22 = vpack.c.bf16 (!%p290_p9), %v344_v20, %v342_v19  ;;  %v343_v24 = vld [vmem:[%s1619_s1 + $0x70] sm:$0xff] (!%p290_p9)  ;;  %v452_v25 = vld [vmem:[%s1621_s3 + $0x80] sm:$0xff] (!%p290_p9)  ;;  %v453_v26 = vld [vmem:[%s1621_s3 + $0x88] sm:$0xff] (!%p290_p9)  ;;  %v1393_v12 = vshrl.u32 (!%p290_p9), %v347_v11, 7 }
  0x13   : > { %v947_v27 = vpack.c.bf16 (!%p290_p9), %v343_v24, %v341_v23  ;;  %v949_v28 = vpack.c.bf16 (!%p290_p9), %v453_v26, %v452_v25  ;;  %v436_v29 = vld [vmem:[%s1621_s3] sm:$0xff] (!%p290_p9)  ;;  %v437_v30 = vld [vmem:[%s1621_s3 + $0x8] sm:$0xff] (!%p290_p9)  ;;  %v454_v31 = vld [vmem:[%s1621_s3 + $0x90] sm:$0xff] (!%p290_p9) }
  0x14   : > { %v455_v32 = vld [vmem:[%s1621_s3 + $0x98] sm:$0xff] (!%p290_p9)  ;;  %v951_v33 = vpack.c.bf16 (!%p290_p9), %v437_v30, %v436_v29  ;;  %v438_v35 = vld [vmem:[%s1621_s3 + $0x10] sm:$0xff] (!%p290_p9)  ;;  %v456_v38 = vld [vmem:[%s1621_s3 + $0xa0] sm:$0xff] (!%p290_p9)  ;;  %v349_v13 = vsub.s32 (!%p290_p9), 0, %v1393_v12 }
  0x15   : > { %s325_s21 = scalar_select %p324_p10, %s1212_s13, 3  ;;  %940 = vmatpush1.bf16.msra.mxu1 %v939_v14  ;;  %v953_v34 = vpack.c.bf16 %v455_v32, %v454_v31  ;;  %v439_v36 = vld [vmem:[%s1621_s3 + $0x18] sm:$0xff]  ;;  %v457_v39 = vld [vmem:[%s1621_s3 + $0xa8] sm:$0xff]  ;;  %v440_v42 = vld [vmem:[%s1621_s3 + $0x20] sm:$0xff] }
  0x16   : > { %942 = vmatprep.subr.bf16.mxu1 %v941_v15  ;;  %v955_v40 = vpack.c.bf16 %v439_v36, %v438_v35  ;;  %v957_v41 = vpack.c.bf16 %v457_v39, %v456_v38  ;;  %v441_v43 = vld [vmem:[%s1621_s3 + $0x28] sm:$0xff]  ;;  %v458_v44 = vld [vmem:[%s1621_s3 + $0xb0] sm:$0xff]  ;;  %v459_v45 = vld [vmem:[%s1621_s3 + $0xb8] sm:$0xff]  ;;  %v353_v15 = vsub.s32 1, %v1393_v12  ;;  %s1140_s13 = smov [#allocation2]  }
  0x17   : > { %s854_s14 = sshll.u32 %s325_s21, 3  ;;  %v959_v46 = vpack.c.bf16 %v441_v43, %v440_v42  ;;  %v961_v47 = vpack.c.bf16 %v459_v45, %v458_v44  ;;  %v442_v48 = vld [vmem:[%s1621_s3 + $0x30] sm:$0xff]  ;;  %v443_v49 = vld [vmem:[%s1621_s3 + $0x38] sm:$0xff]  ;;  %v460_v50 = vld [vmem:[%s1621_s3 + $0xc0] sm:$0xff]  ;;  %s853_s21 = sshll.u32 %s321_s27, 3 }
  0x18   : > { %s327_s22 = scalar_lea.vmem %s1618_s0, %s854_s14  ;;  %s1139_s14 = smov 64   ;;  %v461_v51 = vld [vmem:[%s1621_s3 + $0xc8] sm:$0xff]  ;;  %v963_v52 = vpack.c.bf16 %v443_v49, %v442_v48  ;;  %v444_v54 = vld [vmem:[%s1621_s3 + $0x40] sm:$0xff]  ;;  %v462_v56 = vld [vmem:[%s1621_s3 + $0xd0] sm:$0xff] }
  0x19   : > { %v1280_v18 = vld [vmem:[%s327_s22] sm:$0xff]  ;;  %944 = vmatpush1.bf16.msra.mxu1 %v943_v21  ;;  %v965_v53 = vpack.c.bf16 %v461_v51, %v460_v50  ;;  %v445_v55 = vld [vmem:[%s1621_s3 + $0x48] sm:$0xff]  ;;  %v463_v57 = vld [vmem:[%s1621_s3 + $0xd8] sm:$0xff]  ;;  %s323_s29 = scalar_lea.vmem [#allocation2], %s853_s21  ;;  %s1078_s25 = sshll.u32 %s1140_s13, 4  ;;  %s1079_s25 = int_to_ptr.vmem [resolvable:$false] %s1078_s25 }
  0x1a   : > { %358 = vrot.lane.b32.xlu0 %v1280_v18, %s1139_s14  ;;  %946 = vmatprep.subr.bf16.mxu1 %v945_v22  ;;  %v967_v58 = vpack.c.bf16 %v445_v55, %v444_v54  ;;  %v969_v59 = vpack.c.bf16 %v463_v57, %v462_v56  ;;  %v446_v60 = vld [vmem:[%s1621_s3 + $0x50] sm:$0xff]  ;;  %v447_v61 = vld [vmem:[%s1621_s3 + $0x58] sm:$0xff]  ;;  %v464_v62 = vld [vmem:[%s1621_s3 + $0xe0] sm:$0xff]  ;;  %s790_s16 = sshll.u32 %s323_s29, 4  ;;  %s1080_s26 = scalar_lea.vmem %s1079_s25, 256  ;;  %s1576_s16 = int_to_ptr.vmem [resolvable:$true] %s790_s16 }
  0x1b   : > { %v465_v63 = vld [vmem:[%s1621_s3 + $0xe8] sm:$0xff]  ;;  %v971_v0 = vpack.c.bf16 %v447_v61, %v446_v60  ;;  %v448_v2 = vld [vmem:[%s1621_s3 + $0x60] sm:$0xff]  ;;  %v466_v5 = vld [vmem:[%s1621_s3 + $0xf0] sm:$0xff]  ;;  %s1074_s24 = scalar_lea.vmem %s1576_s16, 128  ;;  %p1081_p0 = scmp.lt.s32.totalorder %s1576_s16, %s1079_s25 }
  0x1c   : > { %v973_v1 = vpack.c.bf16 %v465_v63, %v464_v62  ;;  %v449_v3 = vld [vmem:[%s1621_s3 + $0x68] sm:$0xff]  ;;  %v467_v6 = vld [vmem:[%s1621_s3 + $0xf8] sm:$0xff]  ;;  %v450_v8 = vld [vmem:[%s1621_s3 + $0x70] sm:$0xff]  ;;  %p1075_p11 = scmp.ne.s32.totalorder %s1576_s16, %s1074_s24  ;;  %p1082_p1 = scmp.lt.s32.totalorder %s1080_s26, %s1074_s24 }
  0x1d   : > { %948 = vmatpush1.bf16.msra.mxu1 %v947_v27  ;;  %v975_v4 = vpack.c.bf16 %v449_v3, %v448_v2  ;;  %v977_v7 = vpack.c.bf16 %v467_v6, %v466_v5  ;;  %v451_v9 = vld [vmem:[%s1621_s3 + $0x78] sm:$0xff]  ;;  %v345_v14 = vld [vmem:[%s1620_s2] sm:$0x3]  ;;  %v554_v25 = vld [vmem:[%s1623_s5 + $0x8] sm:$0xff] }
  0x1e   : > { %950 = vmatprep.subr.bf16.mxu1 %v949_v28  ;;  %v979_v10 = vpack.c.bf16 %v451_v9, %v450_v8  ;;  %v350_v16 = vrot.slane %v345_v14, %v349_v13  ;;  %v354_v17 = vrot.slane %v345_v14, %v353_v15  ;;  %v556_v26 = vld [vmem:[%s1623_s5 + $0x18] sm:$0xff]  ;;  %v553_v27 = vld [vmem:[%s1623_s5] sm:$0xff]  ;;  %v555_v29 = vld [vmem:[%s1623_s5 + $0x10] sm:$0xff]  ;;  %p1076_p12 = pnand %p1075_p11, %p1229_p5  ;;  %p1083_p2 = por %p1082_p1, %p1081_p0 }
  0x1f   : > { %v981_v28 = vpack.c.bf16 %v556_v26, %v554_v25  ;;  %v558_v30 = vld [vmem:[%s1623_s5 + $0x28] sm:$0xff]  ;;  %v560_v31 = vld [vmem:[%s1623_s5 + $0x38] sm:$0xff]  ;;  %v983_v32 = vpack.c.bf16 %v555_v29, %v553_v27  ;;  %v559_v35 = vld [vmem:[%s1623_s5 + $0x30] sm:$0xff] }
  0x20   : > { %v562_v36 = vld [vmem:[%s1623_s5 + $0x48] sm:$0xff]  ;;  %v568_v43 = vld [vmem:[%s1623_s5 + $0x78] sm:$0xff]  ;;  %v673_v49 = vld [vmem:[%s1625_s7 + $0x80] sm:$0xff]  ;;  %p1077_p13 = pneg %p1076_p12 }
  0x21   : > { %982 = vmatprep.subr.bf16.mxu0 %v981_v28  ;;  %v566_v42 = vld [vmem:[%s1623_s5 + $0x68] sm:$0xff]  ;;  %v675_v61 = vld [vmem:[%s1625_s7 + $0x90] sm:$0xff]  ;;  %v676_v62 = vld [vmem:[%s1625_s7 + $0x98] sm:$0xff] }
  0x22   : > { %984 = vmatpush1.bf16.msra.mxu0 %v983_v32  ;;  %v993_v45 = vpack.c.bf16 %v568_v43, %v566_v42  ;;  %v674_v50 = vld [vmem:[%s1625_s7 + $0x88] sm:$0xff]  ;;  %v1001_v3 = vpack.c.bf16 %v676_v62, %v675_v61  ;;  %v660_v5 = vld [vmem:[%s1625_s7 + $0x18] sm:$0xff]  ;;  %v677_v6 = vld [vmem:[%s1625_s7 + $0xa0] sm:$0xff]  ;;  %p1084_p3 = pnand %p1083_p2, %p1077_p13 }
  0x23   : > { %v997_v51 = vpack.c.bf16 %v674_v50, %v673_v49  ;;  %v658_v60 = vld [vmem:[%s1625_s7 + $0x8] sm:$0xff]  ;;  %v679_v14 = vld [vmem:[%s1625_s7 + $0xb0] sm:$0xff]  ;;  %v665_v26 = vld [vmem:[%s1625_s7 + $0x40] sm:$0xff] }
  0x24   : > { %v662_v11 = vld [vmem:[%s1625_s7 + $0x28] sm:$0xff]  ;;  %v683_v28 = vld [vmem:[%s1625_s7 + $0xd0] sm:$0xff]  ;;  %v684_v29 = vld [vmem:[%s1625_s7 + $0xd8] sm:$0xff] }
  0x25   : > { %v666_v27 = vld [vmem:[%s1625_s7 + $0x48] sm:$0xff]  ;;  %v667_v32 = vld [vmem:[%s1625_s7 + $0x50] sm:$0xff]  ;;  %v688_v42 = vld [vmem:[%s1625_s7 + $0xf8] sm:$0xff] }
  0x8c   : > { %v359_v37 = vpop.permute.xlu0 %358 }
  0x8d   : > { %855 = vmatmul.mubr.msk.f32.vlgmr.msra.gmra.mrb[0].mxu1 %vm360_vm0, %v359_v37  ;;  %v564_v37 = vld [vmem:[%s1623_s5 + $0x58] sm:$0xff] }
  0x8e   : > { %952 = vmatpush3.bf16.msra.mxu1 %v951_v33  ;;  %v985_v33 = vpack.c.bf16 %v560_v31, %v558_v30  ;;  %v989_v39 = vpack.c.bf16 %v564_v37, %v562_v36  ;;  %v1015_v30 = vpack.c.bf16 %v666_v27, %v665_v26  ;;  %v1017_v31 = vpack.c.bf16 %v684_v29, %v683_v28 }
  0x8f   : > { %954 = vmatprep.subr.bf16.mxu1 %v953_v34  ;;  %v557_v34 = vld [vmem:[%s1623_s5 + $0x20] sm:$0xff] }
  0x90   : > { %v987_v38 = vpack.c.bf16 %v559_v35, %v557_v34  ;;  %986 = vmatprep.subr.bf16.mxu0 %v985_v33  ;;  %v668_v33 = vld [vmem:[%s1625_s7 + $0x58] sm:$0xff]  ;;  %v685_v34 = vld [vmem:[%s1625_s7 + $0xe0] sm:$0xff]  ;;  %v686_v35 = vld [vmem:[%s1625_s7 + $0xe8] sm:$0xff] }
  0x91   : > { %v1019_v36 = vpack.c.bf16 %v668_v33, %v667_v32  ;;  %v1021_v37 = vpack.c.bf16 %v686_v35, %v685_v34 }
  0x92   : > { %956 = vmatpush3.bf16.msra.mxu1 %v955_v40  ;;  %v561_v40 = vld [vmem:[%s1623_s5 + $0x40] sm:$0xff]  ;;  %988 = vmatpush1.bf16.msra.mxu0 %v987_v38 }
  0x93   : > { %958 = vmatprep.subr.bf16.mxu1 %v957_v41  ;;  %v563_v41 = vld [vmem:[%s1623_s5 + $0x50] sm:$0xff]  ;;  %990 = vmatprep.subr.bf16.mxu0 %v989_v39  ;;  %v669_v38 = vld [vmem:[%s1625_s7 + $0x60] sm:$0xff]  ;;  %v670_v39 = vld [vmem:[%s1625_s7 + $0x68] sm:$0xff] }
  0x94   : > { %v991_v44 = vpack.c.bf16 %v563_v41, %v561_v40  ;;  %v1023_v40 = vpack.c.bf16 %v670_v39, %v669_v38  ;;  %v687_v41 = vld [vmem:[%s1625_s7 + $0xf0] sm:$0xff] }
  0x95   : > { %v1025_v43 = vpack.c.bf16 %v688_v42, %v687_v41 }
  0x96   : > { %960 = vmatpush3.bf16.msra.mxu1 %v959_v46  ;;  %v565_v46 = vld [vmem:[%s1623_s5 + $0x60] sm:$0xff]  ;;  %992 = vmatpush1.bf16.msra.mxu0 %v991_v44  ;;  %v671_v44 = vld [vmem:[%s1625_s7 + $0x70] sm:$0xff] }
  0x97   : > { %962 = vmatprep.subr.bf16.mxu1 %v961_v47  ;;  %v567_v47 = vld [vmem:[%s1623_s5 + $0x70] sm:$0xff]  ;;  %994 = vmatprep.subr.bf16.mxu0 %v993_v45  ;;  %v672_v45 = vld [vmem:[%s1625_s7 + $0x78] sm:$0xff] }
  0x98   : > { %v995_v48 = vpack.c.bf16 %v567_v47, %v565_v46  ;;  %v1027_v46 = vpack.c.bf16 %v672_v45, %v671_v44  ;;  %v569_v47 = vld [vmem:[%s1624_s6] sm:$0x3] }
  0x99   : > { %v578_v49 = vrot.slane %v569_v47, %v353_v15 }
  0x9a   : > { %964 = vmatpush3.bf16.msra.mxu1 %v963_v52  ;;  %996 = vmatpush1.bf16.msra.mxu0 %v995_v48  ;;  %v574_v48 = vrot.slane %v569_v47, %v349_v13 }
  0x9b   : > { %966 = vmatprep.subr.bf16.mxu1 %v965_v53  ;;  %998 = vmatprep.subr.bf16.mxu0 %v997_v51  ;;  %v856_v53 = vld [vmem:[%s1622_s4] ss:$0 sm:$0xff] }
  0x9e   : > { %968 = vmatpush3.bf16.msra.mxu1 %v967_v58 }
  0x9f   : > { %970 = vmatprep.subr.bf16.mxu1 %v969_v59  ;;  %v657_v59 = vld [vmem:[%s1625_s7] sm:$0xff] }
  0xa2   : > { %972 = vmatpush3.bf16.msra.mxu1 %v971_v0 }
  0xa3   : > { %974 = vmatprep.subr.bf16.mxu1 %v973_v1  ;;  %v999_v1 = vpack.c.bf16 %v658_v60, %v657_v59 }
  0xa6   : > { %976 = vmatpush3.bf16.msra.mxu1 %v975_v4  ;;  %v659_v4 = vld [vmem:[%s1625_s7 + $0x10] sm:$0xff] }
  0xa7   : > { %978 = vmatprep.subr.bf16.mxu1 %v977_v7  ;;  %v678_v7 = vld [vmem:[%s1625_s7 + $0xa8] sm:$0xff]  ;;  %v1003_v8 = vpack.c.bf16 %v660_v5, %v659_v4 }
  0xa8   : > { %v1005_v9 = vpack.c.bf16 %v678_v7, %v677_v6 }
  0xaa   : > { %980 = vmatpush3.bf16.msra.mxu1 %v979_v10  ;;  %v661_v10 = vld [vmem:[%s1625_s7 + $0x20] sm:$0xff] }
 0x160   : > { %v429_v19 = vpop.f32.mrb[0].mxu1 }
 0x161   : > { %v430_v20 = vadd.f32 %v429_v19, %v350_v16  ;;  %v431_v21 = vpop.f32.mrb[1].mxu1  ;;  %v680_v16 = vld [vmem:[%s1625_s7 + $0xb8] sm:$0xff] }
 0x162   : > { %v432_v22 = vadd.f32 %v431_v21, %v354_v17  ;;  %v1007_v17 = vpack.c.bf16 %v662_v11, %v661_v10  ;;  %v1009_v19 = vpack.c.bf16 %v680_v16, %v679_v14  ;;  %v664_v21 = vld [vmem:[%s1625_s7 + $0x38] sm:$0xff] }
 0x163   : > { %v434_v24 = vmax.f32 %v430_v20, 0.0  ;;  %v663_v20 = vld [vmem:[%s1625_s7 + $0x30] sm:$0xff] }
 0x164   : > { %v435_v23 = vmax.f32 %v432_v22, 0.0  ;;  %v681_v22 = vld [vmem:[%s1625_s7 + $0xc0] sm:$0xff] }
 0x166   : > { %539 = vmatprep.mubr.f32.mxu1 %v435_v23  ;;  %v682_v23 = vld [vmem:[%s1625_s7 + $0xc8] sm:$0xff] }
 0x167   : > { %540 = vmatmul.mubr.f32.vlgmr.msra.gmra.mrb[2].mxu1 %v434_v24  ;;  %v1011_v24 = vpack.c.bf16 %v664_v21, %v663_v20  ;;  %v1013_v25 = vpack.c.bf16 %v682_v23, %v681_v22 }
 0x23a   : > { %v895_v52 = vpop.f32.mrb[2].mxu1 }
 0x23b   : > { %v896_v54 = vpop.f32.mrb[3].mxu1 }
 0x23c   : > { %v897_v55 = vadd.f32 %v896_v54, %v895_v52 }
 0x23e   : > { %v542_v56 = vadd.f32 %v897_v55, %v856_v53 }
 0x240   : > { %549 = vrot.lane.b32.xlu0 %v542_v56, %s1139_s14  ;;  %v545_v57 = vmul.f32 1.442695, %v542_v56 }
 0x242   : > { %1070 = vpow2.f32 %v545_v57  ;;  %v858_v57 = vld [vmem:[%s1626_s8] ss:$0 sm:$0xff] }
 0x24c   : > { %v1071_v58 = vpop.eup %1070 }
 0x24d   : > { %v547_v63 = vmul.f32 %v1071_v58, %v1280_v18 }
 0x2b2   : > { %v550_v0 = vpop.permute.xlu0 %549 }
 0x2b3   : > { %v1475_v2 = vadd.f32 %v550_v0, %v547_v63 }
 0x2b5   : > { %857 = vmatmul.mubr.msk.f32.vlgmr.msra.gmra.mrb[0].mxu0 %vm360_vm0, %v1475_v2 }
 0x2b6   : > { %1000 = vmatpush3.bf16.msra.mxu0 %v999_v1 }
 0x2b7   : > { %1002 = vmatprep.subr.bf16.mxu0 %v1001_v3 }
 0x2ba   : > { %1004 = vmatpush3.bf16.msra.mxu0 %v1003_v8 }
 0x2bb   : > { %1006 = vmatprep.subr.bf16.mxu0 %v1005_v9 }
 0x2be   : > { %1008 = vmatpush3.bf16.msra.mxu0 %v1007_v17 }
 0x2bf   : > { %1010 = vmatprep.subr.bf16.mxu0 %v1009_v19 }
 0x2c2   : > { %1012 = vmatpush3.bf16.msra.mxu0 %v1011_v24 }
 0x2c3   : > { %1014 = vmatprep.subr.bf16.mxu0 %v1013_v25 }
 0x2c6   : > { %1016 = vmatpush3.bf16.msra.mxu0 %v1015_v30 }
 0x2c7   : > { %1018 = vmatprep.subr.bf16.mxu0 %v1017_v31 }
 0x2ca   : > { %1020 = vmatpush3.bf16.msra.mxu0 %v1019_v36 }
 0x2cb   : > { %1022 = vmatprep.subr.bf16.mxu0 %v1021_v37 }
 0x2ce   : > { %1024 = vmatpush3.bf16.msra.mxu0 %v1023_v40 }
 0x2cf   : > { %1026 = vmatprep.subr.bf16.mxu0 %v1025_v43 }
 0x2d2   : > { %1028 = vmatpush3.bf16.msra.mxu0 %v1027_v46 }
 0x388   : > { %v650_v50 = vpop.f32.mrb[0].mxu0 }
 0x389   : > { %v651_v51 = vadd.f32 %v650_v50, %v574_v48  ;;  %v652_v52 = vpop.f32.mrb[1].mxu0 }
 0x38a   : > { %v653_v53 = vadd.f32 %v652_v52, %v578_v49 }
 0x38b   : > { %v655_v55 = vmax.f32 %v651_v51, 0.0 }
 0x38c   : > { %v656_v54 = vmax.f32 %v653_v53, 0.0 }
 0x38e   : > { %760 = vmatprep.mubr.f32.mxu0 %v656_v54 }
 0x38f   : > { %761 = vmatmul.mubr.f32.vlgmr.msra.gmra.mrb[2].mxu0 %v655_v55 }
 0x462   : > { %v930_v56 = vpop.f32.mrb[2].mxu0 }
 0x463   : > { %v931_v58 = vpop.f32.mrb[3].mxu0 }
 0x464   : > { %v932_v13 = vadd.f32 %v931_v58, %v930_v56 }
 0x466   : > { %v763_v59 = vadd.f32 %v932_v13, %v858_v57 }
 0x468   : > { %v766_v12 = vmul.f32 1.442695, %v763_v59 }
 0x46a   : > { %1072 = vpow2.f32 %v766_v12 }
 0x474   : > { %v1073_v15 = vpop.eup %1072 }
 0x475   : > { %769 = vrot.lane.b32.xlu1 %v1073_v15, %s1139_s14  ;;  %s777_s14 = scalar_lea.sflag [#allocation3], %s321_s27 }
 0x4e7   : > { %v770_v60 = vpop.permute.xlu1 %769 }
 0x4e8   : > { %v772_v61 = vmul.f32 %v770_v60, %v1280_v18 }
 0x4ea   : > { %v773_v62 = vadd.f32 %v772_v61, %v763_v59 }
 0x4ec   : > { %v774_v63 = vsel %vm360_vm0, %v1475_v2, %v773_v62 }
 0x4ed   : > { %775 = vst [vmem:[%s323_s29] sm:$0xff] %v774_v63 }
 0x4ee   : > { %1087 = shalt.err (!%p1084_p3)
}
 0x4ef   : > { %s1088_s27 = scalar_lea.hbm %s1574_s23, 128  ;;  %s1092_s29 = scalar_lea.hbm %s1627_s9, 512 }
 0x4f0   : > { %p1089_p4 = scmp.ne.s32.totalorder %s1574_s23, %s1088_s27  ;;  %p1093_p9 = scmp.lt.u32.totalorder %s1574_s23, %s1627_s9 }
 0x4f1   : > { %p1094_p10 = scmp.lt.u32.totalorder %s1092_s29, %s1088_s27  ;;  %p1096_p12 = scmp.lt.u32.totalorder %s1088_s27, %s1574_s23 }
 0x4f2   : > { %p1090_p7 = pnand %p1089_p4, %p1229_p5 }
 0x4f3   : > { %p1095_p11 = por %p1094_p10, %p1093_p9 }
 0x4f4   : > { %p1091_p8 = pneg %p1090_p7 }
 0x4f5   : > { %p1097_p13 = por %p1096_p12, %p1095_p11 }
 0x4f7   : > { %p1098_p0 = pnand %p1097_p13, %p1091_p8 }
 0x4f9   : > { %1101 = shalt.err (!%p1098_p0)
}
 0x4fa   : > { %1029 = dma.vmem_to_hbm [thread:$0]  (%p1229_p5), %s1576_s16, 128, %s1574_s23, %s777_s14  }
 0x4fb PF: > { %p1035_p1 = scmp.ge.s32.totalorder %s1136_s12, 2  ;;  %s802_s24 = sand.u32 1, %s1124_s30  }
 0x4fc   : > { %s803_s13 = scalar_lea.sflag [#allocation3], %s802_s24 }
 0x4fd   : > { %p1032_p2 = pnand %p1035_p1, %p1233_p6 }
 0x4ff   : > { %1119 = dma.done.wait (!%p1032_p2), %s803_s13, 128  }
 0x500   : > { %1121 = vsyncadd (!%p1032_p2), %s803_s13, 4294967168  ;;  %p19_p3 = scmp.ge.s32.totalorder %s1216_s15, 6   ;;  %s1630_s30 = smov %s1128_s10 }
 0x501   : > { %s1631_s10 = smov %s1132_s11  ;;  %s1632_s11 = smov %s1227_s18 }
 0x502   : > { %s1633_s12 = smov %s1216_s15  ;;  %21 = sbr.rel (!%p19_p3) target bundleno = 3 (0x3), region = 91 }
 0x509   :  { %808 = vsyncpa [#allocation3], 1 }
 0x50a   :  { %810 = vsyncpa [#allocation3 + $0x1], 1 }

</bundles_post_ra>
